<compile_context>
chip_gen: v6e
topology: v6e:2x2x1
jax: 0.10.0
libtpu: 0.0.40
codegen_flags: <defaults>
</compile_context>

<pallas_src>
import math
import jax
import jax.numpy as jnp
from jax.experimental import pallas as pl

DROP_P = 0.1                                        # torch.dropout(attn, 0.1, training=True)
_DROP_THRESHOLD = int(round(DROP_P * (1 << 32)))    # drop iff uint32 bits < threshold
_KEEP_SCALE = 1.0 / (1.0 - DROP_P)


def _attn_kernel(x_ref, mask_ref, bits_ref, o_ref):
    # x_ref: (B*H, S, D) f32; mask_ref: (B, S) f32; bits_ref: (B*H, S, S) u32
    x = x_ref[...]
    bh, s, d = x.shape
    b = mask_ref.shape[0]
    h = bh // b
    scale = 1.0 / math.sqrt(d)

    # bf16 operands, f32 accumulation: cuts MXU pass count vs f32xf32.
    xb = x.astype(jnp.bfloat16)

    # attn = (Q @ K^T) / sqrt(d) + mask      (Q = K = V = x)
    attn = jnp.einsum("bqd,bkd->bqk", xb, xb,
                      preferred_element_type=jnp.float32)        # (BH, S, S)
    mask = mask_ref[...]                                         # (B, S)
    # broadcast mask to heads in-kernel (leading-dim reshapes only; free splat)
    attn = attn.reshape(b, h, s, s) * scale + mask[:, None, None, :]
    attn = attn.reshape(bh, s, s)

    # numerically-stable softmax over the key dim (matches torch.softmax)
    attn = attn - jnp.max(attn, axis=-1, keepdims=True)
    e = jnp.exp(attn)
    p = e / jnp.sum(e, axis=-1, keepdims=True)

    # dropout(p=0.1, training=True): integer-domain keep decision on uniform
    # uint32 bits (drop iff bits < round(p * 2**32)); survivors scaled 1/(1-p).
    keep = bits_ref[...] >= jnp.uint32(_DROP_THRESHOLD)
    p = jnp.where(keep, p * _KEEP_SCALE, 0.0)

    # output = attn @ V
    out = jnp.einsum("bqk,bkd->bqd", p.astype(jnp.bfloat16), xb,
                     preferred_element_type=jnp.float32)
    o_ref[...] = out.astype(o_ref.dtype)


def model_forward(x, attn_mask, key):
    """x: (B, H, S, D) f32; attn_mask: (B, S) f32; key: PRNG key for dropout."""
    B, H, S, D = x.shape
    x_flat = x.reshape(B * H, S, D)
    # Dropout randomness is generated outside the kernel: pltpu.prng_* has no
    # CPU/interpret lowering, and a fresh key per call gives fresh masks.
    # TODO(synk): torch's dropout RNG stream cannot be bit-reproduced; outputs
    # are distributionally (not bitwise) equivalent to the torch reference.
    bits = jax.random.bits(key, (B * H, S, S), dtype=jnp.uint32)

    out_flat = pl.pallas_call(
        _attn_kernel,
        out_shape=jax.ShapeDtypeStruct((B * H, S, D), x.dtype),
        grid=(1,),
        in_specs=[
            pl.BlockSpec((B * H, S, D), lambda i: (0, 0, 0)),   # x (full block)
            pl.BlockSpec((B, S), lambda i: (0, 0)),             # mask (full block)
            pl.BlockSpec((B * H, S, S), lambda i: (0, 0, 0)),   # dropout bits
        ],
        out_specs=pl.BlockSpec((B * H, S, D), lambda i: (0, 0, 0)),
        # ~5 KiB total resident data: single grid step, no tiling, no
        # vmem_limit tuning.  Lane-dense output reshape intentionally skipped:
        # the output is 2 KiB and an in-kernel (...,8)->(...,128) relayout
        # would cost more than the masked stores it removes.
    )(x_flat, attn_mask, bits)

    return out_flat.reshape(B, H, S, D)


if __name__ == "__main__":
    root = jax.random.PRNGKey(0)
    xkey, dkey = jax.random.split(root)
    B, H, S, D = 2, 4, 8, 8   # batch=2 and seq=8 fixed by the module's attn_mask
    x = jax.random.normal(xkey, (B, H, S, D), dtype=jnp.float32)
    attn_mask = jnp.array(
        [[0.0, 0.0, 0.0, 0.0, 0.0, 1.0, 1.0, 1.0],
         [0.0, 0.0, 0.0, 0.0, 0.0, 1.0, 1.0, 1.0]],
        dtype=jnp.float32,
    )
    out = model_forward(x, attn_mask, dkey)
    jax.block_until_ready(out)
    assert out.shape == (B, H, S, D) and out.dtype == jnp.float32
    assert bool(jnp.all(jnp.isfinite(out)))
    print("KERNEL_OK")
</pallas_src>

<mosaic_0001>
module attributes {stable_mosaic.version = 11 : i64} {
  func.func @_attn_kernel(%arg0: i32, %arg1: memref<8x8x8xf32, #tpu.memory_space<vmem>>, %arg2: memref<2x8xf32, #tpu.memory_space<vmem>>, %arg3: memref<8x8x8xi32, #tpu.memory_space<vmem>>, %arg4: memref<8x8x8xf32, #tpu.memory_space<vmem>>) attributes {dimension_semantics = [#tpu.dimension_semantics<arbitrary>], iteration_bounds = array<i64: 1>, scalar_prefetch = 0 : i64, scratch_operands = 0 : i64, tpu.core_type = #tpu.core_type<tc>, window_params = [{pipeline_mode = #tpu.pipeline_mode<synchronous>, transform_indices = @transform_0, window_bounds = array<i64: 8, 8, 8>}, {pipeline_mode = #tpu.pipeline_mode<synchronous>, transform_indices = @transform_1, window_bounds = array<i64: 2, 8>}, {pipeline_mode = #tpu.pipeline_mode<synchronous>, transform_indices = @transform_2, window_bounds = array<i64: 8, 8, 8>}, {pipeline_mode = #tpu.pipeline_mode<synchronous>, transform_indices = @transform_3, window_bounds = array<i64: 8, 8, 8>}]} {
    %c0 = arith.constant 0 : index
    %c0_0 = arith.constant 0 : index
    %c0_1 = arith.constant 0 : index
    %0 = vector.load %arg1[%c0, %c0_0, %c0_1] : memref<8x8x8xf32, #tpu.memory_space<vmem>>, vector<8x8x8xf32>
    %1 = arith.truncf %0 : vector<8x8x8xf32> to vector<8x8x8xbf16>
    "tpu.trace_start"() <{level = 10 : i32, message = "bqd,bkd->bqk"}> : () -> ()
    %cst = arith.constant dense<0.000000e+00> : vector<8x8x8xf32>
    %2 = tpu.matmul %1, %1, %cst {dimension_numbers = #tpu.dot_dimension_numbers<[2], [2], [1], [1], [0, 0, 0, 1, 1, 1], [0], [0]>} : vector<8x8x8xbf16>, vector<8x8x8xbf16>, vector<8x8x8xf32> -> vector<8x8x8xf32>
    "tpu.trace_stop"() : () -> ()
    %c0_2 = arith.constant 0 : index
    %c0_3 = arith.constant 0 : index
    %3 = vector.load %arg2[%c0_2, %c0_3] : memref<2x8xf32, #tpu.memory_space<vmem>>, vector<2x8xf32>
    %4 = vector.shape_cast %2 : vector<8x8x8xf32> to vector<2x4x8x8xf32>
    %cst_4 = arith.constant 0.353553385 : f32
    %5 = vector.broadcast %cst_4 : f32 to vector<2x4x8x8xf32>
    %6 = arith.mulf %4, %5 : vector<2x4x8x8xf32>
    %7 = vector.shape_cast %3 : vector<2x8xf32> to vector<2x1x1x8xf32>
    %8 = vector.broadcast %7 : vector<2x1x1x8xf32> to vector<2x4x8x8xf32>
    %9 = arith.addf %6, %8 : vector<2x4x8x8xf32>
    %10 = vector.shape_cast %9 : vector<2x4x8x8xf32> to vector<8x8x8xf32>
    %cst_5 = arith.constant dense<0xFF800000> : vector<8x8xf32>
    %11 = vector.multi_reduction <maximumf>, %10, %cst_5 [2] : vector<8x8x8xf32> to vector<8x8xf32>
    %12 = vector.shape_cast %11 : vector<8x8xf32> to vector<8x8x1xf32>
    %13 = vector.broadcast %12 : vector<8x8x1xf32> to vector<8x8x8xf32>
    %14 = arith.subf %10, %13 : vector<8x8x8xf32>
    %15 = math.exp %14 : vector<8x8x8xf32>
    %cst_6 = arith.constant dense<0.000000e+00> : vector<8x8xf32>
    %16 = vector.multi_reduction <add>, %15, %cst_6 [2] : vector<8x8x8xf32> to vector<8x8xf32>
    %17 = vector.shape_cast %16 : vector<8x8xf32> to vector<8x8x1xf32>
    %18 = vector.broadcast %17 : vector<8x8x1xf32> to vector<8x8x8xf32>
    %19 = arith.divf %15, %18 : vector<8x8x8xf32>
    %c0_7 = arith.constant 0 : index
    %c0_8 = arith.constant 0 : index
    %c0_9 = arith.constant 0 : index
    %20 = vector.load %arg3[%c0_7, %c0_8, %c0_9] : memref<8x8x8xi32, #tpu.memory_space<vmem>>, vector<8x8x8xi32>
    %c429496730_i32 = arith.constant 429496730 : i32
    %21 = vector.broadcast %c429496730_i32 : i32 to vector<8x8x8xi32>
    %22 = arith.cmpi uge, %20, %21 : vector<8x8x8xi32>
    %cst_10 = arith.constant 1.11111116 : f32
    %23 = vector.broadcast %cst_10 : f32 to vector<8x8x8xf32>
    %24 = arith.mulf %19, %23 : vector<8x8x8xf32>
    %cst_11 = arith.constant 0.000000e+00 : f32
    %25 = vector.broadcast %cst_11 : f32 to vector<8x8x8xf32>
    %26 = arith.select %22, %24, %25 : vector<8x8x8xi1>, vector<8x8x8xf32>
    %27 = arith.truncf %26 : vector<8x8x8xf32> to vector<8x8x8xbf16>
    "tpu.trace_start"() <{level = 10 : i32, message = "bqk,bkd->bqd"}> : () -> ()
    %cst_12 = arith.constant dense<0.000000e+00> : vector<8x8x8xf32>
    %28 = tpu.matmul %27, %1, %cst_12 {dimension_numbers = #tpu.dot_dimension_numbers<[2], [1], [1], [2], [0, 0, 0, 1, 1, 2], [0], [0]>} : vector<8x8x8xbf16>, vector<8x8x8xbf16>, vector<8x8x8xf32> -> vector<8x8x8xf32>
    "tpu.trace_stop"() : () -> ()
    %c0_13 = arith.constant 0 : index
    %c0_14 = arith.constant 0 : index
    %c0_15 = arith.constant 0 : index
    %29 = vector.load %arg4[%c0_13, %c0_14, %c0_15] : memref<8x8x8xf32, #tpu.memory_space<vmem>>, vector<8x8x8xf32>
    tpu.vector_store %arg4[%c0_13, %c0_14, %c0_15], %28 {strides = array<i32>} : memref<8x8x8xf32, #tpu.memory_space<vmem>>, vector<8x8x8xf32>,
    return
  }
  func.func @transform_0(%arg0: i32) -> (i32, i32, i32) {
    %c0_i32 = arith.constant 0 : i32
    %c0_i32_0 = arith.constant 0 : i32
    %c0_i32_1 = arith.constant 0 : i32
    %c0_i32_2 = arith.constant 0 : i32
    return %c0_i32, %c0_i32_0, %c0_i32_1 : i32, i32, i32
  }
  func.func @transform_1(%arg0: i32) -> (i32, i32) {
    %c0_i32 = arith.constant 0 : i32
    %c0_i32_0 = arith.constant 0 : i32
    %c0_i32_1 = arith.constant 0 : i32
    return %c0_i32, %c0_i32_0 : i32, i32
  }
  func.func @transform_2(%arg0: i32) -> (i32, i32, i32) {
    %c0_i32 = arith.constant 0 : i32
    %c0_i32_0 = arith.constant 0 : i32
    %c0_i32_1 = arith.constant 0 : i32
    %c0_i32_2 = arith.constant 0 : i32
    return %c0_i32, %c0_i32_0, %c0_i32_1 : i32, i32, i32
  }
  func.func @transform_3(%arg0: i32) -> (i32, i32, i32) {
    %c0_i32 = arith.constant 0 : i32
    %c0_i32_0 = arith.constant 0 : i32
    %c0_i32_1 = arith.constant 0 : i32
    %c0_i32_2 = arith.constant 0 : i32
    return %c0_i32, %c0_i32_0, %c0_i32_1 : i32, i32, i32
  }
}

</mosaic_0001>

<bundles_post_ra>
// kernel: tpu_custom_call.1
= control target key start
LH: loop header
LB: loop body
LE: loop exit
PB: predicated region body
PF: predicated region fallthrough
CT: control target
= control target key end

     0   :  { %8 = vsyncpa [#allocation3], 0  ;;  %s1475_s0 = inlined_call_operand.hbm [shape: f32[8,8,8], index: 0, kind: input, shape index: {}]   ;;  %s1476_s1 = inlined_call_operand.hbm [shape: f32[2,8], index: 1, kind: input, shape index: {}]   ;;  %s1477_s2 = inlined_call_operand.hbm [shape: u32[8,8,8], index: 2, kind: input, shape index: {}]   ;;  %s1478_s3 = inlined_call_operand.hbm [shape: f32[8,8,8], index: 3, kind: output, shape index: {}]  }
   0x1   :  { %9 = vsyncpa [#allocation6], 0 }
   0x2   :  { %10 = vsyncpa [#allocation4], 0  ;;  %s1253_s12 = smov [#allocation5]   ;;  %s1254_s14 = smov [#allocation2]  }
   0x3   :  { %s29_s13 = sshll.u32 %s1253_s12, 4  ;;  %s16_s15 = sshll.u32 %s1254_s14, 4  ;;  %s30_s13 = int_to_ptr.vmem [resolvable:$true] %s29_s13  ;;  %s17_s15 = int_to_ptr.vmem [resolvable:$true] %s16_s15 }
   0x4   :  { %s1175_s16 = scalar_lea.vmem %s30_s13, 32  ;;  %p1180_p1 = scmp.lt.s32.totalorder %s30_s13, %s30_s13 }
   0x5   :  { %p1176_p0 = scmp.ne.s32.totalorder %s30_s13, %s1175_s16  ;;  %p1181_p2 = scmp.lt.s32.totalorder %s1175_s16, %s1175_s16 }
   0x7   :  { %p1182_p3 = por %p1181_p2, %p1180_p1 }
   0x9   :  { %p1183_p4 = pnand %p1182_p3, %p1176_p0 }
   0xb   :  { %1186 = shalt.err (!%p1183_p4)
}
   0xc   :  { %32 = dma.hbm_to_vmem [thread:$0]  %s1476_s1, 32, %s30_s13, [#allocation6]  }
   0xd   :  { %s1195_s19 = scalar_lea.vmem %s17_s15, 1024  ;;  %p1200_p6 = scmp.lt.s32.totalorder %s17_s15, %s17_s15 }
   0xe   :  { %p1196_p5 = scmp.ne.s32.totalorder %s17_s15, %s1195_s19  ;;  %p1201_p7 = scmp.lt.s32.totalorder %s1195_s19, %s1195_s19 }
  0x10   :  { %p1202_p8 = por %p1201_p7, %p1200_p6 }
  0x12   :  { %p1203_p9 = pnand %p1202_p8, %p1196_p5 }
  0x14   :  { %1206 = shalt.err (!%p1203_p9)
}
  0x15   :  { %s1255_s20 = smov 128   ;;  %s1256_s21 = smov 8  }
  0x16   :  { %22 = dma.hbm_to_vmem [thread:$0]  %s1475_s0, 1024, %s17_s15, [#allocation3], %s1255_s20, %s1255_s20, %s1256_s21  }
  0x17   :  { %s1257_s24 = smov [#allocation7]  }
  0x18   :  { %s38_s25 = sshll.u32 %s1257_s24, 4  ;;  %s39_s25 = int_to_ptr.vmem [resolvable:$true] %s38_s25 }
  0x19   :  { %s1215_s1 = scalar_lea.vmem %s39_s25, 1024  ;;  %p1220_p11 = scmp.lt.s32.totalorder %s39_s25, %s39_s25 }
  0x1a   :  { %p1216_p10 = scmp.ne.s32.totalorder %s39_s25, %s1215_s1  ;;  %p1221_p12 = scmp.lt.s32.totalorder %s1215_s1, %s1215_s1 }
  0x1c   :  { %p1222_p13 = por %p1221_p12, %p1220_p11 }
  0x1e   :  { %p1223_p0 = pnand %p1222_p13, %p1216_p10 }
  0x20   :  { %1226 = shalt.err (!%p1223_p0)
}
  0x21   :  { %44 = dma.hbm_to_vmem [thread:$0]  %s1477_s2, 1024, %s39_s25, [#allocation6], %s1255_s20, %s1255_s20, %s1256_s21  }
  0x22   :  { %1247 = dma.done.wait [#allocation3], 1024  }
  0x23   :  { %1248 = vsyncadd [#allocation3], 4294966272 }
  0x24   :  { %1249 = dma.done.wait [#allocation6], 1056  }
  0x25   :  { %1250 = vsyncadd [#allocation6], 4294966240  ;;  %v1258_v0 = vmov 0.0   ;;  %vm1259_vm0 = vmmov 0   ;;  %v55_v1 = vld [vmem:[#allocation2] sm:$0xff]  ;;  %vm71_vm1 = vcmask 64512   ;;  %v437_v27 = vlaneseq }
  0x26   :  { %1030 = vmatprep.subr.bf16.mxu0 %v1258_v0  ;;  %1036 = vmatprep.subr.bf16.mxu1 %v1258_v0  ;;  %v56_v2 = vld [vmem:[#allocation2 + $0x8] sm:$0xff]  ;;  %v1303_v3 = vpack.c.bf16 %v55_v1, %v55_v1  ;;  %v57_v5 = vld [vmem:[#allocation2 + $0x10] sm:$0xff]  ;;  %v58_v6 = vld [vmem:[#allocation2 + $0x18] sm:$0xff]  ;;  %v1260_v25 = vmov 1966171168   ;;  %vm597_vm2 = vcmask 1043456  }
  0x27   :  { %1032 = vmatprep.mubr.msk.bf16.mxu0 %vm1259_vm0, %v1258_v0  ;;  %1038 = vmatprep.mubr.msk.bf16.mxu1 %vm1259_vm0, %v1258_v0  ;;  %v1305_v4 = vpack.c.bf16 %v56_v2, %v56_v2  ;;  %v1313_v9 = vpack.c.bf16 %v57_v5, %v57_v5  ;;  %v1315_v10 = vpack.c.bf16 %v58_v6, %v58_v6  ;;  %v59_v13 = vld [vmem:[#allocation2 + $0x20] sm:$0xff]  ;;  %v60_v14 = vld [vmem:[#allocation2 + $0x28] sm:$0xff]  ;;  %v61_v19 = vld [vmem:[#allocation2 + $0x30] sm:$0xff]  ;;  %v435_v26 = vunpack.c.l.s4 %v1260_v25  ;;  %s1261_s0 = smov [#allocation8]  }
  0x28   :  { %v73_v7 = vsel %vm71_vm1, %v1303_v3, 0  ;;  %v1329_v15 = vpack.c.bf16 %v59_v13, %v59_v13  ;;  %v1331_v16 = vpack.c.bf16 %v60_v14, %v60_v14  ;;  %v62_v20 = vld [vmem:[#allocation2 + $0x38] sm:$0xff]  ;;  %v1347_v21 = vpack.c.bf16 %v61_v19, %v61_v19  ;;  %v989_v31 = vld.sshfl [vmem:[#allocation5] sm:$0x11 pattern:$0x75316420] }
  0x29   :  { %v116_v8 = vsel %vm71_vm1, %v1305_v4, 0  ;;  %1031 = vmatpush3.bf16.xpose.msra.mxu0 %v73_v7  ;;  %v159_v11 = vsel %vm71_vm1, %v1313_v9, 0  ;;  %v202_v12 = vsel %vm71_vm1, %v1315_v10, 0  ;;  %v1349_v22 = vpack.c.bf16 %v62_v20, %v62_v20  ;;  %s968_s2 = sshll.u32 %s1261_s0, 4  ;;  %s969_s2 = int_to_ptr.vmem [resolvable:$true] %s968_s2 }
  0x2a   :  { %1037 = vmatpush3.bf16.xpose.msra.mxu1 %v116_v8  ;;  %1042 = vmatprep.subr.bf16.mxu0 %v1258_v0  ;;  %v245_v17 = vsel %vm71_vm1, %v1329_v15, 0  ;;  %v288_v18 = vsel %vm71_vm1, %v1331_v16, 0  ;;  %v331_v23 = vsel %vm71_vm1, %v1347_v21, 0  ;;  %v436_v28 = vunpack.c.0.s8 %v435_v26  ;;  %s1227_s28 = scalar_lea.vmem %s969_s2, 1024  ;;  %p1232_p2 = scmp.lt.s32.totalorder %s969_s2, %s969_s2 }
  0x2b   :  { %1048 = vmatprep.subr.bf16.mxu1 %v1258_v0  ;;  %v374_v24 = vsel %vm71_vm1, %v1349_v22, 0  ;;  %v438_v29 = vshrl.u32 %v437_v27, 7  ;;  %v433_v48 = vcombine.high %v989_v31, %v989_v31  ;;  %p1228_p1 = scmp.ne.s32.totalorder %s969_s2, %s1227_s28  ;;  %p1233_p3 = scmp.lt.s32.totalorder %s1227_s28, %s1227_s28 }
  0x2d   :  { %v439_v30 = vsub.s32 %v436_v28, %v438_v29  ;;  %v450_v33 = vsub.s32 0, %v438_v29  ;;  %p1234_p4 = por %p1233_p3, %p1232_p2 }
  0x2f   :  { %v440_v32 = vrot.slane %v989_v31, %v439_v30  ;;  %v447_v58 = vrot.slane %v433_v48, %v439_v30  ;;  %p1235_p5 = pnand %p1234_p4, %p1228_p1 }
  0x30   :  { %1033 = vmatmul.mubr.msk.bf16.vlgmr.msra.gmra.mxu0 %vm71_vm1, %v1303_v3 }
  0x31   :  { %1039 = vmatmul.mubr.msk.bf16.vlgmr.msra.gmra.mxu1 %vm71_vm1, %v1305_v4  ;;  %1043 = vmatpush3.bf16.xpose.msra.mxu0 %v159_v11  ;;  %v451_v34 = vrot.slane %v440_v32, %v450_v33  ;;  %v455_v2 = vrot.slane %v447_v58, %v450_v33 }
  0x32   :  { %1049 = vmatpush3.bf16.xpose.msra.mxu1 %v202_v12  ;;  %1044 = vmatprep.mubr.msk.bf16.mxu0 %vm1259_vm0, %v1258_v0 }
  0x33   :  { %1050 = vmatprep.mubr.msk.bf16.mxu1 %vm1259_vm0, %v1258_v0  ;;  %1054 = vmatprep.subr.bf16.mxu0 %v1258_v0 }
  0x34   :  { %1060 = vmatprep.subr.bf16.mxu1 %v1258_v0 }
  0x38   :  { %1045 = vmatmul.mubr.msk.bf16.vlgmr.msra.gmra.mxu0 %vm71_vm1, %v1313_v9 }
  0x39   :  { %1051 = vmatmul.mubr.msk.bf16.vlgmr.msra.gmra.mxu1 %vm71_vm1, %v1315_v10  ;;  %1055 = vmatpush3.bf16.xpose.msra.mxu0 %v245_v17 }
  0x3a   :  { %1061 = vmatpush3.bf16.xpose.msra.mxu1 %v288_v18  ;;  %1056 = vmatprep.mubr.msk.bf16.mxu0 %vm1259_vm0, %v1258_v0 }
  0x3b   :  { %1062 = vmatprep.mubr.msk.bf16.mxu1 %vm1259_vm0, %v1258_v0  ;;  %1066 = vmatprep.subr.bf16.mxu0 %v1258_v0 }
  0x3c   :  { %1072 = vmatprep.subr.bf16.mxu1 %v1258_v0 }
  0x40   :  { %1057 = vmatmul.mubr.msk.bf16.vlgmr.msra.gmra.mxu0 %vm71_vm1, %v1329_v15 }
  0x41   :  { %1063 = vmatmul.mubr.msk.bf16.vlgmr.msra.gmra.mxu1 %vm71_vm1, %v1331_v16  ;;  %1067 = vmatpush3.bf16.xpose.msra.mxu0 %v331_v23 }
  0x42   :  { %1073 = vmatpush3.bf16.xpose.msra.mxu1 %v374_v24  ;;  %1068 = vmatprep.mubr.msk.bf16.mxu0 %vm1259_vm0, %v1258_v0 }
  0x43   :  { %1074 = vmatprep.mubr.msk.bf16.mxu1 %vm1259_vm0, %v1258_v0  ;;  %1078 = vmatprep.subr.bf16.mxu0 %v1258_v0 }
  0x44   :  { %1084 = vmatprep.subr.bf16.mxu1 %v1258_v0 }
  0x48   :  { %1069 = vmatmul.mubr.msk.bf16.vlgmr.msra.gmra.mxu0 %vm71_vm1, %v1347_v21 }
  0x49   :  { %1075 = vmatmul.mubr.msk.bf16.vlgmr.msra.gmra.mxu1 %vm71_vm1, %v1349_v22  ;;  %1080 = vmatprep.mubr.msk.bf16.mxu0 %vm1259_vm0, %v1258_v0 }
  0x4a   :  { %1086 = vmatprep.mubr.msk.bf16.mxu1 %vm1259_vm0, %v1258_v0 }
  0xf0   :  { %v109_v35 = vpop.f32.mrf.mxu0 }
  0xf1   :  { %v152_v36 = vpop.f32.mrf.mxu1  ;;  %v417_v37 = vmul.f32 0.35355338, %v109_v35 }
  0xf2   :  { %v418_v38 = vmul.f32 0.35355338, %v152_v36  ;;  %v1034_v39 = vpop.f32.mrf.mxu0 }
  0xf3   :  { %v1040_v40 = vpop.f32.mrf.mxu1  ;;  %v1375_v41 = vadd.f32 %v451_v34, %v417_v37 }
  0xf4   :  { %v1377_v42 = vadd.f32 %v451_v34, %v418_v38  ;;  %v112_v43 = vpop.f32.mrf.mxu0 }
  0xf5   :  { %v155_v44 = vpop.f32.mrf.mxu1  ;;  %v466_v45 = vsel %vm71_vm1, %v1375_v41, -inf }
  0xf6   :  { %467 = vmax.xlane.f32.xlu0 %v466_v45  ;;  %v1035_v47 = vpop.f32.mrf.mxu0  ;;  %v469_v49 = vsel %vm71_vm1, %v1377_v42, -inf }
  0xf7   :  { %v1041_v46 = vpop.f32.mrf.mxu1 }
  0xf8   :  { %v195_v50 = vpop.f32.mrf.mxu0 }
  0xf9   :  { %v238_v51 = vpop.f32.mrf.mxu1  ;;  %v419_v52 = vmul.f32 0.35355338, %v195_v50 }
  0xfa   :  { %v420_v53 = vmul.f32 0.35355338, %v238_v51  ;;  %470 = vmax.xlane.f32.xlu0 %v469_v49  ;;  %v1046_v55 = vpop.f32.mrf.mxu0 }
  0xfb   :  { %v1052_v54 = vpop.f32.mrf.mxu1  ;;  %v460_v56 = vadd.f32 %v451_v34, %v419_v52 }
  0xfc   :  { %v461_v57 = vadd.f32 %v451_v34, %v420_v53  ;;  %v198_v59 = vpop.f32.mrf.mxu0 }
  0xfd   :  { %v241_v60 = vpop.f32.mrf.mxu1  ;;  %v472_v61 = vsel %vm71_vm1, %v460_v56, -inf }
  0xfe   :  { %473 = vmax.xlane.f32.xlu1 %v472_v61  ;;  %v1047_v63 = vpop.f32.mrf.mxu0  ;;  %v475_v1 = vsel %vm71_vm1, %v461_v57, -inf }
  0xff   :  { %v1053_v62 = vpop.f32.mrf.mxu1 }
 0x100   :  { %v281_v5 = vpop.f32.mrf.mxu0 }
 0x101   :  { %v324_v6 = vpop.f32.mrf.mxu1  ;;  %v421_v7 = vmul.f32 0.35355338, %v281_v5 }
 0x102   :  { %v422_v8 = vmul.f32 0.35355338, %v324_v6  ;;  %476 = vmax.xlane.f32.xlu1 %v475_v1  ;;  %v1058_v12 = vpop.f32.mrf.mxu0 }
 0x103   :  { %v1064_v11 = vpop.f32.mrf.mxu1  ;;  %v462_v14 = vadd.f32 %v455_v2, %v421_v7 }
 0x104   :  { %v463_v13 = vadd.f32 %v455_v2, %v422_v8  ;;  %v284_v17 = vpop.f32.mrf.mxu0 }
 0x105   :  { %v327_v18 = vpop.f32.mrf.mxu1  ;;  %v478_v20 = vsel %vm71_vm1, %v462_v14, -inf }
 0x106   :  { %v481_v19 = vsel %vm71_vm1, %v463_v13, -inf  ;;  %479 = vmax.xlane.f32.xlu0 %v478_v20  ;;  %v1059_v24 = vpop.f32.mrf.mxu0 }
 0x107   :  { %v1065_v23 = vpop.f32.mrf.mxu1  ;;  %482 = vmax.xlane.f32.xlu1 %v481_v19  ;;  %v598_v24 = vsel %vm597_vm2, %v1303_v3, 0 }
 0x108   :  { %v367_v25 = vpop.f32.mrf.mxu0  ;;  %1079 = vmatpush3.bf16.msra.mxu0 %v598_v24 }
 0x109   :  { %v410_v26 = vpop.f32.mrf.mxu1  ;;  %v423_v27 = vmul.f32 0.35355338, %v367_v25  ;;  %1090 = vmatprep.subr.bf16.mxu0 %v1258_v0  ;;  %v643_v25 = vsel %vm597_vm2, %v1305_v4, 0  ;;  %v555_v4 = vld [vmem:[#allocation7 + $0x8] sm:$0xff] }
 0x10a   :  { %v424_v28 = vmul.f32 0.35355338, %v410_v26  ;;  %v1070_v29 = vpop.f32.mrf.mxu0  ;;  %1085 = vmatpush3.bf16.msra.mxu1 %v643_v25  ;;  %vm563_vm4 = vcmp.ge.u32.totalorder %v555_v4, 429496730 }
 0x10b   :  { %v1076_v30 = vpop.f32.mrf.mxu1  ;;  %v464_v32 = vadd.f32 %v455_v2, %v423_v27  ;;  %1096 = vmatprep.subr.bf16.mxu1 %v1258_v0 }
 0x10c   :  { %v465_v31 = vadd.f32 %v455_v2, %v424_v28  ;;  %v370_v33 = vpop.f32.mrf.mxu0  ;;  %v554_v30 = vld [vmem:[#allocation7] sm:$0xff] }
 0x10d   :  { %v413_v34 = vpop.f32.mrf.mxu1  ;;  %v484_v36 = vsel %vm71_vm1, %v464_v32, -inf  ;;  %vm562_vm3 = vcmp.ge.u32.totalorder %v554_v30, 429496730 }
 0x10e   :  { %v487_v35 = vsel %vm71_vm1, %v465_v31, -inf  ;;  %485 = vmax.xlane.f32.xlu0 %v484_v36  ;;  %v1071_v38 = vpop.f32.mrf.mxu0 }
 0x10f   :  { %v1077_v37 = vpop.f32.mrf.mxu1  ;;  %488 = vmax.xlane.f32.xlu1 %v487_v35 }
 0x17f   :  { %v468_v39 = vpop.xlane.xlu0 %467 }
 0x180   :  { %v490_v40 = vsub.f32 %v1375_v41, %v468_v39  ;;  %v688_v39 = vsel %vm597_vm2, %v1313_v9, 0 }
 0x182   :  { %v498_v43 = vmul.f32 1.442695, %v490_v40 }
 0x183   :  { %v471_v44 = vpop.xlane.xlu0 %470 }
 0x184   :  { %1135 = vpow2.f32 %v498_v43  ;;  %v491_v45 = vsub.f32 %v1377_v42, %v471_v44  ;;  %v556_v43 = vld [vmem:[#allocation7 + $0x10] sm:$0xff] }
 0x185   :  { %vm564_vm5 = vcmp.ge.u32.totalorder %v556_v43, 429496730 }
 0x186   :  { %v500_v46 = vmul.f32 1.442695, %v491_v45 }
 0x187   :  { %v474_v47 = vpop.xlane.xlu1 %473 }
 0x188   :  { %1137 = vpow2.f32 %v500_v46  ;;  %v492_v48 = vsub.f32 %v460_v56, %v474_v47 }
 0x18a   :  { %v502_v49 = vmul.f32 1.442695, %v492_v48 }
 0x18b   :  { %v477_v50 = vpop.xlane.xlu1 %476 }
 0x18c   :  { %1139 = vpow2.f32 %v502_v49  ;;  %v493_v51 = vsub.f32 %v461_v57, %v477_v50  ;;  %v733_v49 = vsel %vm597_vm2, %v1315_v10, 0  ;;  %v778_v10 = vsel %vm597_vm2, %v1329_v15, 0 }
 0x18d   :  { %v823_v15 = vsel %vm597_vm2, %v1331_v16, 0  ;;  %v868_v16 = vsel %vm597_vm2, %v1347_v21, 0 }
 0x18e   :  { %v504_v52 = vmul.f32 1.442695, %v493_v51  ;;  %v557_v51 = vld [vmem:[#allocation7 + $0x18] sm:$0xff] }
 0x18f   :  { %v480_v54 = vpop.xlane.xlu0 %479  ;;  %vm565_vm6 = vcmp.ge.u32.totalorder %v557_v51, 429496730 }
 0x190   :  { %v483_v53 = vpop.xlane.xlu1 %482  ;;  %1141 = vpow2.f32 %v504_v52  ;;  %v494_v58 = vsub.f32 %v462_v14, %v480_v54 }
 0x191   :  { %v495_v55 = vsub.f32 %v463_v13, %v483_v53  ;;  %v1136_v41 = vpop.eup %1135 }
 0x192   :  { %v506_v60 = vmul.f32 1.442695, %v494_v58  ;;  %v514_v61 = vsel %vm71_vm1, %v1136_v41, 0.0 }
 0x193   :  { %v508_v59 = vmul.f32 1.442695, %v495_v55  ;;  %515 = vadd.xlane.f32.xlu0 %v514_v61 }
 0x195   :  { %1143 = vpow2.f32 %v508_v59  ;;  %v1138_v42 = vpop.eup %1137  ;;  %v558_v59 = vld [vmem:[#allocation7 + $0x20] sm:$0xff] }
 0x196   :  { %1145 = vpow2.f32 %v506_v60  ;;  %v517_v56 = vsel %vm71_vm1, %v1138_v42, 0.0  ;;  %vm566_vm7 = vcmp.ge.u32.totalorder %v558_v59, 429496730 }
 0x197   :  { %518 = vadd.xlane.f32.xlu1 %v517_v56  ;;  %v486_v57 = vpop.xlane.xlu0 %485  ;;  %v559_v56 = vld [vmem:[#allocation7 + $0x28] sm:$0xff] }
 0x198   :  { %v489_v62 = vpop.xlane.xlu1 %488  ;;  %v496_v1 = vsub.f32 %v464_v32, %v486_v57  ;;  %vm567_vm8 = vcmp.ge.u32.totalorder %v559_v56, 429496730 }
 0x199   :  { %v497_v63 = vsub.f32 %v465_v31, %v489_v62  ;;  %v1140_v2 = vpop.eup %1139 }
 0x19a   :  { %v510_v6 = vmul.f32 1.442695, %v496_v1  ;;  %v520_v7 = vsel %vm71_vm1, %v1140_v2, 0.0 }
 0x19b   :  { %v512_v5 = vmul.f32 1.442695, %v497_v63  ;;  %521 = vadd.xlane.f32.xlu0 %v520_v7 }
 0x19d   :  { %1147 = vpow2.f32 %v512_v5  ;;  %v1394_v8 = vpop.eup %1141 }
 0x19e   :  { %1149 = vpow2.f32 %v510_v6  ;;  %v523_v11 = vsel %vm71_vm1, %v1394_v8, 0.0 }
 0x19f   :  { %524 = vadd.xlane.f32.xlu1 %v523_v11 }
 0x1a2   :  { %v1398_v12 = vpop.eup %1143 }
 0x1a3   :  { %v1400_v13 = vpop.eup %1145  ;;  %v529_v14 = vsel %vm71_vm1, %v1398_v12, 0.0 }
 0x1a4   :  { %530 = vadd.xlane.f32.xlu1 %v529_v14  ;;  %v526_v17 = vsel %vm71_vm1, %v1400_v13, 0.0 }
 0x1a5   :  { %527 = vadd.xlane.f32.xlu0 %v526_v17 }
 0x1aa   :  { %v1406_v18 = vpop.eup %1147 }
 0x1ab   :  { %v1408_v19 = vpop.eup %1149  ;;  %v535_v20 = vsel %vm71_vm1, %v1406_v18, 0.0 }
 0x1ac   :  { %536 = vadd.xlane.f32.xlu1 %v535_v20  ;;  %v532_v23 = vsel %vm71_vm1, %v1408_v19, 0.0  ;;  %v913_v20 = vsel %vm597_vm2, %v1349_v22, 0 }
 0x1ad   :  { %533 = vadd.xlane.f32.xlu0 %v532_v23 }
 0x21c   :  { %v516_v26 = vpop.xlane.xlu0 %515 }
 0x21d   :  { %1151 = vrcp.f32 %v516_v26 }
 0x220   :  { %v519_v27 = vpop.xlane.xlu1 %518 }
 0x221   :  { %1153 = vrcp.f32 %v519_v27 }
 0x224   :  { %v522_v28 = vpop.xlane.xlu0 %521 }
 0x225   :  { %1155 = vrcp.f32 %v522_v28 }
 0x228   :  { %v525_v29 = vpop.xlane.xlu1 %524 }
 0x229   :  { %1157 = vrcp.f32 %v525_v29 }
 0x22a   :  { %v1152_v31 = vpop.eup %1151 }
 0x22b   :  { %v539_v3 = vmul.f32 %v1152_v31, %v1136_v41 }
 0x22d   :  { %v531_v32 = vpop.xlane.xlu1 %530  ;;  %v570_v34 = vmul.f32 1.1111112, %v539_v3 }
 0x22e   :  { %1159 = vrcp.f32 %v531_v32  ;;  %v528_v33 = vpop.xlane.xlu0 %527  ;;  %v1154_v35 = vpop.eup %1153 }
 0x22f   :  { %1161 = vrcp.f32 %v528_v33  ;;  %v541_v36 = vmul.f32 %v1154_v35, %v1138_v42  ;;  %v578_v37 = vsel %vm562_vm3, %v570_v34, 0.0 }
 0x230   :  { %v586_v38 = vpack.c.bf16 %v578_v37, %v578_v37 }
 0x231   :  { %v571_v40 = vmul.f32 1.1111112, %v541_v36 }
 0x232   :  { %v1156_v44 = vpop.eup %1155  ;;  %1081 = vmatmul.mubr.msk.bf16.vlgmr.msra.gmra.mxu0 %vm71_vm1, %v586_v38 }
 0x233   :  { %v543_v45 = vmul.f32 %v1156_v44, %v1140_v2  ;;  %v579_v46 = vsel %vm563_vm4, %v571_v40, 0.0  ;;  %1091 = vmatpush3.bf16.msra.mxu0 %v688_v39  ;;  %1092 = vmatprep.mubr.msk.bf16.mxu0 %vm1259_vm0, %v1258_v0 }
 0x234   :  { %v587_v48 = vpack.c.bf16 %v579_v46, %v579_v46  ;;  %1102 = vmatprep.subr.bf16.mxu0 %v1258_v0 }
 0x235   :  { %v537_v47 = vpop.xlane.xlu1 %536  ;;  %v572_v50 = vmul.f32 1.1111112, %v543_v45 }
 0x236   :  { %1163 = vrcp.f32 %v537_v47  ;;  %v534_v9 = vpop.xlane.xlu0 %533  ;;  %v1158_v52 = vpop.eup %1157  ;;  %1087 = vmatmul.mubr.msk.bf16.vlgmr.msra.gmra.mxu1 %vm71_vm1, %v587_v48 }
 0x237   :  { %1165 = vrcp.f32 %v534_v9  ;;  %v545_v53 = vmul.f32 %v1158_v52, %v1394_v8  ;;  %1097 = vmatpush3.bf16.msra.mxu1 %v733_v49  ;;  %v580_v54 = vsel %vm564_vm5, %v572_v50, 0.0  ;;  %1098 = vmatprep.mubr.msk.bf16.mxu1 %vm1259_vm0, %v1258_v0  ;;  %v560_v8 = vld [vmem:[#allocation7 + $0x30] sm:$0xff] }
 0x238   :  { %v588_v55 = vpack.c.bf16 %v580_v54, %v580_v54  ;;  %1108 = vmatprep.subr.bf16.mxu1 %v1258_v0  ;;  %vm568_vm9 = vcmp.ge.u32.totalorder %v560_v8, 429496730 }
 0x239   :  { %v573_v58 = vmul.f32 1.1111112, %v545_v53 }
 0x23a   :  { %1093 = vmatmul.mubr.msk.bf16.vlgmr.msra.gmra.mxu0 %vm71_vm1, %v588_v55 }
 0x23b   :  { %v1160_v41 = vpop.eup %1159  ;;  %v581_v42 = vsel %vm565_vm6, %v573_v58, 0.0  ;;  %1103 = vmatpush3.bf16.msra.mxu0 %v778_v10  ;;  %1104 = vmatprep.mubr.msk.bf16.mxu0 %vm1259_vm0, %v1258_v0 }
 0x23c   :  { %v1162_v60 = vpop.eup %1161  ;;  %v549_v61 = vmul.f32 %v1160_v41, %v1398_v12  ;;  %v589_v57 = vpack.c.bf16 %v581_v42, %v581_v42  ;;  %1114 = vmatprep.subr.bf16.mxu0 %v1258_v0 }
 0x23d   :  { %v547_v62 = vmul.f32 %v1162_v60, %v1400_v13  ;;  %v561_v13 = vld [vmem:[#allocation7 + $0x38] sm:$0xff] }
 0x23e   :  { %v575_v63 = vmul.f32 1.1111112, %v549_v61  ;;  %1099 = vmatmul.mubr.msk.bf16.vlgmr.msra.gmra.mxu1 %vm71_vm1, %v589_v57  ;;  %vm569_vm10 = vcmp.ge.u32.totalorder %v561_v13, 429496730 }
 0x23f   :  { %v574_v1 = vmul.f32 1.1111112, %v547_v62  ;;  %1109 = vmatpush3.bf16.msra.mxu1 %v823_v15  ;;  %1110 = vmatprep.mubr.msk.bf16.mxu1 %vm1259_vm0, %v1258_v0 }
 0x240   :  { %1120 = vmatprep.subr.bf16.mxu1 %v1258_v0  ;;  %v583_v6 = vsel %vm567_vm8, %v575_v63, 0.0 }
 0x241   :  { %v582_v2 = vsel %vm566_vm7, %v574_v1, 0.0  ;;  %v591_v17 = vpack.c.bf16 %v583_v6, %v583_v6 }
 0x242   :  { %v590_v5 = vpack.c.bf16 %v582_v2, %v582_v2 }
 0x243   :  { %v1164_v7 = vpop.eup %1163 }
 0x244   :  { %v1166_v11 = vpop.eup %1165  ;;  %v553_v12 = vmul.f32 %v1164_v7, %v1406_v18  ;;  %1105 = vmatmul.mubr.msk.bf16.vlgmr.msra.gmra.mxu0 %vm71_vm1, %v590_v5 }
 0x245   :  { %v551_v14 = vmul.f32 %v1166_v11, %v1408_v19  ;;  %1115 = vmatpush3.bf16.msra.mxu0 %v868_v16  ;;  %1116 = vmatprep.mubr.msk.bf16.mxu0 %vm1259_vm0, %v1258_v0 }
 0x246   :  { %v577_v21 = vmul.f32 1.1111112, %v553_v12  ;;  %1111 = vmatmul.mubr.msk.bf16.vlgmr.msra.gmra.mxu1 %vm71_vm1, %v591_v17 }
 0x247   :  { %v576_v23 = vmul.f32 1.1111112, %v551_v14  ;;  %1121 = vmatpush3.bf16.msra.mxu1 %v913_v20  ;;  %1122 = vmatprep.mubr.msk.bf16.mxu1 %vm1259_vm0, %v1258_v0 }
 0x248   :  { %v585_v24 = vsel %vm569_vm10, %v577_v21, 0.0 }
 0x249   :  { %v584_v18 = vsel %vm568_vm9, %v576_v23, 0.0  ;;  %v593_v25 = vpack.c.bf16 %v585_v24, %v585_v24 }
 0x24a   :  { %v592_v19 = vpack.c.bf16 %v584_v18, %v584_v18 }
 0x24c   :  { %1117 = vmatmul.mubr.msk.bf16.vlgmr.msra.gmra.mxu0 %vm71_vm1, %v592_v19 }
 0x24e   :  { %1123 = vmatmul.mubr.msk.bf16.vlgmr.msra.gmra.mxu1 %vm71_vm1, %v593_v25 }
 0x2f2   :  { %v634_v22 = vpop.f32.mrf.mxu0 }
 0x2f3   :  { %955 = vst.msk [vmem:[#allocation8] sm:$0xff] %vm71_vm1, %v634_v22 }
 0x2f4   :  { %v1082_v26 = vpop.f32.mrf.mxu0 }
 0x2f6   :  { %v637_v27 = vpop.f32.mrf.mxu0  ;;  %v679_v28 = vpop.f32.mrf.mxu1 }
 0x2f7   :  { %956 = vst.msk [vmem:[#allocation8 + $0x8] sm:$0xff] %vm71_vm1, %v679_v28 }
 0x2f8   :  { %v1083_v29 = vpop.f32.mrf.mxu0  ;;  %v1088_v30 = vpop.f32.mrf.mxu1 }
 0x2fa   :  { %v682_v31 = vpop.f32.mrf.mxu1  ;;  %v724_v0 = vpop.f32.mrf.mxu0 }
 0x2fb   :  { %957 = vst.msk [vmem:[#allocation8 + $0x10] sm:$0xff] %vm71_vm1, %v724_v0 }
 0x2fc   :  { %v1089_v3 = vpop.f32.mrf.mxu1  ;;  %v1094_v32 = vpop.f32.mrf.mxu0 }
 0x2fe   :  { %v727_v33 = vpop.f32.mrf.mxu0  ;;  %v769_v34 = vpop.f32.mrf.mxu1 }
 0x2ff   :  { %958 = vst.msk [vmem:[#allocation8 + $0x18] sm:$0xff] %vm71_vm1, %v769_v34 }
 0x300   :  { %v1095_v4 = vpop.f32.mrf.mxu0  ;;  %v1100_v35 = vpop.f32.mrf.mxu1 }
 0x302   :  { %v772_v36 = vpop.f32.mrf.mxu1 }
 0x304   :  { %v814_v37 = vpop.f32.mrf.mxu0  ;;  %v1101_v38 = vpop.f32.mrf.mxu1 }
 0x305   :  { %959 = vst.msk [vmem:[#allocation8 + $0x20] sm:$0xff] %vm71_vm1, %v814_v37 }
 0x306   :  { %v1106_v39 = vpop.f32.mrf.mxu0  ;;  %v859_v40 = vpop.f32.mrf.mxu1 }
 0x307   :  { %960 = vst.msk [vmem:[#allocation8 + $0x28] sm:$0xff] %vm71_vm1, %v859_v40 }
 0x308   :  { %v817_v43 = vpop.f32.mrf.mxu0  ;;  %v1112_v44 = vpop.f32.mrf.mxu1 }
 0x30a   :  { %v1107_v45 = vpop.f32.mrf.mxu0  ;;  %v862_v46 = vpop.f32.mrf.mxu1 }
 0x30c   :  { %v904_v47 = vpop.f32.mrf.mxu0  ;;  %v1113_v48 = vpop.f32.mrf.mxu1 }
 0x30d   :  { %961 = vst.msk [vmem:[#allocation8 + $0x30] sm:$0xff] %vm71_vm1, %v904_v47 }
 0x30e   :  { %v1118_v49 = vpop.f32.mrf.mxu0  ;;  %v949_v9 = vpop.f32.mrf.mxu1 }
 0x30f   :  { %962 = vst.msk [vmem:[#allocation8 + $0x38] sm:$0xff] %vm71_vm1, %v949_v9 }
 0x310   :  { %v907_v50 = vpop.f32.mrf.mxu0  ;;  %v1124_v51 = vpop.f32.mrf.mxu1 }
 0x311   :  { %1238 = shalt.err (!%p1235_p5)
}
 0x312   :  { %974 = dma.vmem_to_hbm [thread:$0]  %s969_s2, 1024, %s1478_s3, [#allocation4], %s1255_s20, %s1255_s20, %s1256_s21   ;;  %v1119_v52 = vpop.f32.mrf.mxu0  ;;  %v952_v53 = vpop.f32.mrf.mxu1 }
 0x314   :  { %v1125_v54 = vpop.f32.mrf.mxu1 }
 0x315   :  { %1251 = dma.done.wait [#allocation4], 1024  }
 0x316   :  { %1252 = vsyncadd [#allocation4], 4294966272 }
 0x317   :  { %978 = vsyncpa [#allocation3], 1 }
 0x318   :  { %979 = vsyncpa [#allocation6], 1 }
 0x319   :  { %980 = vsyncpa [#allocation4], 1 }

</bundles_post_ra>
